<compile_context>
chip_gen: v5e
topology: v5e:2x2
jax: 0.10.0
libtpu: 0.0.40
codegen_flags: <defaults>
</compile_context>

<pallas_src>
import jax
import jax.numpy as jnp
from jax.experimental import pallas as pl
from jax.experimental.pallas import tpu as pltpu

# Hyperparameters (module defaults, small input/output dims for the demo).
INPUT_DIM = 12      # N  (e.g. 8 state dims + action_size=4)
OUTPUT_DIM = 8      # S
EMB_DIM = 10
HIDDEN_DIM = 64
CAUSAL_DIM = 32
NUM_HIDDEN = 4
BATCH = 4

# bias_slab layout (rows, all HIDDEN_DIM wide):
#   [0]                      we0_row0          (row of we0 multiplying the scalar input)
#   [1 : 1+N]                enc_bias0 = enc_emb @ we0[1:] + be0
#   [1+N : 1+N+NH]           beh (encoder hidden biases)
#   [1+N+NH]                 beo padded C->H
#   [2+N+NH : 2+N+NH+S]      dbias0 = dec_emb @ wd0[C:] + bd0
#   [2+N+NH+S : 2+N+NH+S+NH] bdh (decoder hidden biases)
#   [2+N+2NH+S]              wdo_row (final 64->1 projection, as a row)
#   [3+N+2NH+S]              bdo broadcast across lanes (scalar used from lane 0)
BIAS_ROWS = 4 + INPUT_DIM + OUTPUT_DIM + 2 * NUM_HIDDEN   # = 32


def _causal_kernel(x_ref, mask_ref, w_ref, bias_ref, out_ref):
    f32 = jnp.float32
    N, S, NH = INPUT_DIM, OUTPUT_DIM, NUM_HIDDEN

    x = x_ref[0]                                                    # (N, 1)

    # ---- encoder first layer: VPU outer product + folded embedding bias ----
    h = jnp.maximum(x * bias_ref[0:1, :] + bias_ref[1:1 + N, :], 0.0)        # (N, H)

    # ---- encoder hidden layers ----
    for i in range(NH):
        h = jnp.maximum(
            jnp.dot(h, w_ref[i], preferred_element_type=f32)
            + bias_ref[1 + N + i:2 + N + i, :], 0.0)

    # ---- encoder output layer (weights padded C -> H; lanes C: stay zero) ----
    latent = (jnp.dot(h, w_ref[NH], preferred_element_type=f32)
              + bias_ref[1 + N + NH:2 + N + NH, :])                          # (N, H)

    # ---- hard causal mask shared across the batch: (S,N) @ (N,H) ----
    masked = jnp.dot(mask_ref[...], latent, preferred_element_type=f32)      # (S, H)

    # ---- decoder first layer (idx-embedding contribution folded into dbias0) ----
    base = 2 + N + NH
    hd = jnp.maximum(
        jnp.dot(masked, w_ref[NH + 1], preferred_element_type=f32)
        + bias_ref[base:base + S, :], 0.0)                                   # (S, H)

    # ---- decoder hidden layers ----
    for i in range(NH):
        hd = jnp.maximum(
            jnp.dot(hd, w_ref[NH + 2 + i], preferred_element_type=f32)
            + bias_ref[base + S + i:base + S + i + 1, :], 0.0)

    # ---- final 64 -> 1 projection as VPU multiply + lane reduce ----
    wdo_row = bias_ref[base + S + NH:base + S + NH + 1, :]                   # (1, H)
    bdo = bias_ref[base + S + NH + 1:base + S + NH + 2, 0:1]                 # (1, 1)
    out_ref[0] = jnp.sum(hd * wdo_row, axis=-1, keepdims=True) + bdo         # (S, 1)


def causal_sim2real_forward(inputs, params, threshold=0.5):
    """inputs: (B, INPUT_DIM) float32 -> (B, OUTPUT_DIM) float32."""
    if threshold is None:
        # TODO(synk): stochastic gumbel-softmax mask branch not implemented.
        raise NotImplementedError("only the deterministic threshold mask is supported")
    B, N = inputs.shape
    assert N == INPUT_DIM
    S, C, H, NH = OUTPUT_DIM, CAUSAL_DIM, HIDDEN_DIM, NUM_HIDDEN
    f32 = jnp.float32

    # Batch-dependent input: one scalar per (b, n) row, kernel does the outer product.
    x3 = inputs.astype(f32).reshape(B, N, 1)

    # Hard mask, transposed so the kernel applies it as (S, N) @ (N, H).
    mask_t = (jax.nn.sigmoid(params["mask_prob"]) > threshold).astype(f32).T     # (S, N)

    # ---- pack all HxH weights into one slab ----
    weo_pad = jnp.pad(params["weo"], ((0, 0), (0, H - C)))                        # (H, H)
    wd0_c_pad = jnp.pad(params["wd0"][:C], ((0, H - C), (0, 0)))                  # (H, H)
    w_stack = jnp.concatenate(
        [params["weh"], weo_pad[None], wd0_c_pad[None], params["wdh"]], axis=0)   # (2NH+2,H,H)

    # ---- pack every bias / row vector (and folded embedding terms) into one slab ----
    we0 = params["we0"]
    we0_row0 = we0[0:1]                                                           # (1, H)
    enc_bias0 = params["enc_emb"] @ we0[1:] + params["be0"]                       # (N, H)
    beh = params["beh"][:, 0, :]                                                  # (NH, H)
    beo_pad = jnp.pad(params["beo"], ((0, 0), (0, H - C)))                        # (1, H)
    dbias0 = params["dec_emb"] @ params["wd0"][C:] + params["bd0"]                # (S, H)
    bdh = params["bdh"][:, 0, :]                                                  # (NH, H)
    wdo_row = params["wdo"].T                                                     # (1, H)
    bdo_row = jnp.broadcast_to(params["bdo"], (1, H))                             # (1, H)
    bias_slab = jnp.concatenate(
        [we0_row0, enc_bias0, beh, beo_pad, dbias0, bdh, wdo_row, bdo_row], axis=0)
    assert bias_slab.shape == (BIAS_ROWS, H)

    per_batch_flops = 2 * ((NH + 1) * (N + S) * H * H + S * N * H + S * H)
    bytes_accessed = 4 * (x3.size + mask_t.size + w_stack.size + bias_slab.size + B * S)

    out = pl.pallas_call(
        _causal_kernel,
        out_shape=jax.ShapeDtypeStruct((B, S, 1), f32),
        grid_spec=pltpu.PrefetchScalarGridSpec(
            num_scalar_prefetch=0,
            grid=(B,),
            in_specs=[
                pl.BlockSpec((1, N, 1), lambda b: (b, 0, 0)),            # per-batch input
                pl.BlockSpec((S, N), lambda b: (0, 0)),                  # shared mask
                pl.BlockSpec((2 * NH + 2, H, H), lambda b: (0, 0, 0)),   # shared weights
                pl.BlockSpec((BIAS_ROWS, H), lambda b: (0, 0)),          # shared bias slab
            ],
            out_specs=pl.BlockSpec((1, S, 1), lambda b: (b, 0, 0)),
        ),
        compiler_params=pltpu.CompilerParams(
            dimension_semantics=("parallel",),
            vmem_limit_bytes=32 * 1024 * 1024),
        cost_estimate=pl.CostEstimate(
            flops=int(B * per_batch_flops),
            bytes_accessed=int(bytes_accessed),
            transcendentals=0),
    )(x3, mask_t, w_stack, bias_slab)
    return out.reshape(B, S)


def init_params(key):
    """Deterministic synthetic parameters matching CausalSim2Real.__init__ shapes
    (weights stored in (in, out) convention)."""
    ks = jax.random.split(key, 16)
    s = 0.1
    p = {}
    p["enc_emb"] = s * jax.random.normal(ks[0], (INPUT_DIM, EMB_DIM), jnp.float32)
    p["dec_emb"] = s * jax.random.normal(ks[1], (OUTPUT_DIM, EMB_DIM), jnp.float32)
    # encoder MLP: (emb+1) -> hidden, NUM_HIDDEN x hidden -> hidden, hidden -> causal
    p["we0"] = s * jax.random.normal(ks[2], (EMB_DIM + 1, HIDDEN_DIM), jnp.float32)
    p["be0"] = s * jax.random.normal(ks[3], (1, HIDDEN_DIM), jnp.float32)
    p["weh"] = s * jax.random.normal(ks[4], (NUM_HIDDEN, HIDDEN_DIM, HIDDEN_DIM), jnp.float32)
    p["beh"] = s * jax.random.normal(ks[5], (NUM_HIDDEN, 1, HIDDEN_DIM), jnp.float32)
    p["weo"] = s * jax.random.normal(ks[6], (HIDDEN_DIM, CAUSAL_DIM), jnp.float32)
    p["beo"] = s * jax.random.normal(ks[7], (1, CAUSAL_DIM), jnp.float32)
    # decoder MLP: (causal+emb) -> hidden, NUM_HIDDEN x hidden -> hidden, hidden -> 1
    p["wd0"] = s * jax.random.normal(ks[8], (CAUSAL_DIM + EMB_DIM, HIDDEN_DIM), jnp.float32)
    p["bd0"] = s * jax.random.normal(ks[9], (1, HIDDEN_DIM), jnp.float32)
    p["wdh"] = s * jax.random.normal(ks[10], (NUM_HIDDEN, HIDDEN_DIM, HIDDEN_DIM), jnp.float32)
    p["bdh"] = s * jax.random.normal(ks[11], (NUM_HIDDEN, 1, HIDDEN_DIM), jnp.float32)
    p["wdo"] = s * jax.random.normal(ks[12], (HIDDEN_DIM, 1), jnp.float32)
    p["bdo"] = s * jax.random.normal(ks[13], (1, 1), jnp.float32)
    # mask_prob: module uses 3*ones; random init here exercises a non-trivial mask
    p["mask_prob"] = jax.random.normal(ks[14], (INPUT_DIM, OUTPUT_DIM), jnp.float32)
    return p


def reference(inputs, p, threshold=0.5):
    """Pure-JAX reference mirroring the PyTorch forward."""
    B, N = inputs.shape
    xf = jnp.concatenate(
        [inputs[:, :, None], jnp.broadcast_to(p["enc_emb"][None], (B, N, EMB_DIM))], axis=-1)
    h = jax.nn.relu(xf @ p["we0"] + p["be0"])
    for i in range(NUM_HIDDEN):
        h = jax.nn.relu(h @ p["weh"][i] + p["beh"][i])
    latent = h @ p["weo"] + p["beo"]
    mask = (jax.nn.sigmoid(p["mask_prob"]) > threshold).astype(jnp.float32)
    masked = jnp.einsum("bnc,ns->bsc", latent, mask)
    dec_in = jnp.concatenate(
        [masked, jnp.broadcast_to(p["dec_emb"][None], (B, OUTPUT_DIM, EMB_DIM))], axis=-1)
    hd = jax.nn.relu(dec_in @ p["wd0"] + p["bd0"])
    for i in range(NUM_HIDDEN):
        hd = jax.nn.relu(hd @ p["wdh"][i] + p["bdh"][i])
    return (hd @ p["wdo"] + p["bdo"])[..., 0]


if __name__ == "__main__":
    key = jax.random.PRNGKey(0)
    pkey, xkey = jax.random.split(key)
    params = init_params(pkey)
    inputs = jax.random.normal(xkey, (BATCH, INPUT_DIM), jnp.float32)

    fwd = jax.jit(lambda x, p: causal_sim2real_forward(x, p, threshold=0.5))
    out = jax.block_until_ready(fwd(inputs, params))

    ref = reference(inputs, params, threshold=0.5)
    assert out.shape == (BATCH, OUTPUT_DIM), out.shape
    if not jnp.allclose(out, ref, atol=1e-3, rtol=1e-3):
        raise AssertionError(
            f"mismatch: max abs diff = {float(jnp.max(jnp.abs(out - ref)))}")
    print("KERNEL_OK")
</pallas_src>

<mosaic_0001>
module attributes {stable_mosaic.version = 11 : i64} {
  func.func @_causal_kernel(%arg0: i32, %arg1: memref<1x12x1xf32, #tpu.memory_space<vmem>>, %arg2: memref<8x12xf32, #tpu.memory_space<vmem>>, %arg3: memref<10x64x64xf32, #tpu.memory_space<vmem>>, %arg4: memref<32x64xf32, #tpu.memory_space<vmem>>, %arg5: memref<1x8x1xf32, #tpu.memory_space<vmem>>) attributes {dimension_semantics = [#tpu.dimension_semantics<parallel>], iteration_bounds = array<i64: 4>, scalar_prefetch = 0 : i64, scratch_operands = 0 : i64, tpu.core_type = #tpu.core_type<tc>, window_params = [{transform_indices = @transform_0, window_bounds = array<i64: 1, 12, 1>}, {pipeline_mode = #tpu.pipeline_mode<synchronous>, transform_indices = @transform_1, window_bounds = array<i64: 8, 12>}, {pipeline_mode = #tpu.pipeline_mode<synchronous>, transform_indices = @transform_2, window_bounds = array<i64: 10, 64, 64>}, {pipeline_mode = #tpu.pipeline_mode<synchronous>, transform_indices = @transform_3, window_bounds = array<i64: 32, 64>}, {transform_indices = @transform_4, window_bounds = array<i64: 1, 8, 1>}]} {
    %c0 = arith.constant 0 : index
    %c0_0 = arith.constant 0 : index
    %c0_1 = arith.constant 0 : index
    %0 = vector.load %arg1[%c0, %c0_0, %c0_1] : memref<1x12x1xf32, #tpu.memory_space<vmem>>, vector<1x12x1xf32>
    %1 = vector.shape_cast %0 : vector<1x12x1xf32> to vector<12x1xf32>
    %c0_2 = arith.constant 0 : index
    %c0_3 = arith.constant 0 : index
    %2 = vector.load %arg4[%c0_2, %c0_3] : memref<32x64xf32, #tpu.memory_space<vmem>>, vector<1x64xf32>
    %3 = vector.broadcast %1 : vector<12x1xf32> to vector<12x64xf32>
    %4 = vector.broadcast %2 : vector<1x64xf32> to vector<12x64xf32>
    %5 = arith.mulf %3, %4 : vector<12x64xf32>
    %c1 = arith.constant 1 : index
    %c0_4 = arith.constant 0 : index
    %6 = vector.load %arg4[%c1, %c0_4] : memref<32x64xf32, #tpu.memory_space<vmem>>, vector<12x64xf32>
    %7 = arith.addf %5, %6 : vector<12x64xf32>
    %cst = arith.constant 0.000000e+00 : f32
    %8 = vector.broadcast %cst : f32 to vector<12x64xf32>
    %9 = arith.maximumf %7, %8 : vector<12x64xf32>
    %c0_5 = arith.constant 0 : index
    %c0_6 = arith.constant 0 : index
    %c0_7 = arith.constant 0 : index
    %10 = vector.load %arg3[%c0_5, %c0_6, %c0_7] : memref<10x64x64xf32, #tpu.memory_space<vmem>>, vector<1x64x64xf32>
    %11 = vector.shape_cast %10 : vector<1x64x64xf32> to vector<64x64xf32>
    %cst_8 = arith.constant dense<0.000000e+00> : vector<12x64xf32>
    %12 = tpu.matmul %9, %11, %cst_8 {dimension_numbers = #tpu.dot_dimension_numbers<[1], [0], [0], [1], [0, 0, 1, 1], [], []>} : vector<12x64xf32>, vector<64x64xf32>, vector<12x64xf32> -> vector<12x64xf32>
    %c13 = arith.constant 13 : index
    %c0_9 = arith.constant 0 : index
    %13 = vector.load %arg4[%c13, %c0_9] : memref<32x64xf32, #tpu.memory_space<vmem>>, vector<1x64xf32>
    %14 = vector.broadcast %13 : vector<1x64xf32> to vector<12x64xf32>
    %15 = arith.addf %12, %14 : vector<12x64xf32>
    %cst_10 = arith.constant 0.000000e+00 : f32
    %16 = vector.broadcast %cst_10 : f32 to vector<12x64xf32>
    %17 = arith.maximumf %15, %16 : vector<12x64xf32>
    %c1_11 = arith.constant 1 : index
    %c0_12 = arith.constant 0 : index
    %c0_13 = arith.constant 0 : index
    %18 = vector.load %arg3[%c1_11, %c0_12, %c0_13] : memref<10x64x64xf32, #tpu.memory_space<vmem>>, vector<1x64x64xf32>
    %19 = vector.shape_cast %18 : vector<1x64x64xf32> to vector<64x64xf32>
    %cst_14 = arith.constant dense<0.000000e+00> : vector<12x64xf32>
    %20 = tpu.matmul %17, %19, %cst_14 {dimension_numbers = #tpu.dot_dimension_numbers<[1], [0], [0], [1], [0, 0, 1, 1], [], []>} : vector<12x64xf32>, vector<64x64xf32>, vector<12x64xf32> -> vector<12x64xf32>
    %c14 = arith.constant 14 : index
    %c0_15 = arith.constant 0 : index
    %21 = vector.load %arg4[%c14, %c0_15] : memref<32x64xf32, #tpu.memory_space<vmem>>, vector<1x64xf32>
    %22 = vector.broadcast %21 : vector<1x64xf32> to vector<12x64xf32>
    %23 = arith.addf %20, %22 : vector<12x64xf32>
    %cst_16 = arith.constant 0.000000e+00 : f32
    %24 = vector.broadcast %cst_16 : f32 to vector<12x64xf32>
    %25 = arith.maximumf %23, %24 : vector<12x64xf32>
    %c2 = arith.constant 2 : index
    %c0_17 = arith.constant 0 : index
    %c0_18 = arith.constant 0 : index
    %26 = vector.load %arg3[%c2, %c0_17, %c0_18] : memref<10x64x64xf32, #tpu.memory_space<vmem>>, vector<1x64x64xf32>
    %27 = vector.shape_cast %26 : vector<1x64x64xf32> to vector<64x64xf32>
    %cst_19 = arith.constant dense<0.000000e+00> : vector<12x64xf32>
    %28 = tpu.matmul %25, %27, %cst_19 {dimension_numbers = #tpu.dot_dimension_numbers<[1], [0], [0], [1], [0, 0, 1, 1], [], []>} : vector<12x64xf32>, vector<64x64xf32>, vector<12x64xf32> -> vector<12x64xf32>
    %c15 = arith.constant 15 : index
    %c0_20 = arith.constant 0 : index
    %29 = vector.load %arg4[%c15, %c0_20] : memref<32x64xf32, #tpu.memory_space<vmem>>, vector<1x64xf32>
    %30 = vector.broadcast %29 : vector<1x64xf32> to vector<12x64xf32>
    %31 = arith.addf %28, %30 : vector<12x64xf32>
    %cst_21 = arith.constant 0.000000e+00 : f32
    %32 = vector.broadcast %cst_21 : f32 to vector<12x64xf32>
    %33 = arith.maximumf %31, %32 : vector<12x64xf32>
    %c3 = arith.constant 3 : index
    %c0_22 = arith.constant 0 : index
    %c0_23 = arith.constant 0 : index
    %34 = vector.load %arg3[%c3, %c0_22, %c0_23] : memref<10x64x64xf32, #tpu.memory_space<vmem>>, vector<1x64x64xf32>
    %35 = vector.shape_cast %34 : vector<1x64x64xf32> to vector<64x64xf32>
    %cst_24 = arith.constant dense<0.000000e+00> : vector<12x64xf32>
    %36 = tpu.matmul %33, %35, %cst_24 {dimension_numbers = #tpu.dot_dimension_numbers<[1], [0], [0], [1], [0, 0, 1, 1], [], []>} : vector<12x64xf32>, vector<64x64xf32>, vector<12x64xf32> -> vector<12x64xf32>
    %c16 = arith.constant 16 : index
    %c0_25 = arith.constant 0 : index
    %37 = vector.load %arg4[%c16, %c0_25] : memref<32x64xf32, #tpu.memory_space<vmem>>, vector<1x64xf32>
    %38 = vector.broadcast %37 : vector<1x64xf32> to vector<12x64xf32>
    %39 = arith.addf %36, %38 : vector<12x64xf32>
    %cst_26 = arith.constant 0.000000e+00 : f32
    %40 = vector.broadcast %cst_26 : f32 to vector<12x64xf32>
    %41 = arith.maximumf %39, %40 : vector<12x64xf32>
    %c4 = arith.constant 4 : index
    %c0_27 = arith.constant 0 : index
    %c0_28 = arith.constant 0 : index
    %42 = vector.load %arg3[%c4, %c0_27, %c0_28] : memref<10x64x64xf32, #tpu.memory_space<vmem>>, vector<1x64x64xf32>
    %43 = vector.shape_cast %42 : vector<1x64x64xf32> to vector<64x64xf32>
    %cst_29 = arith.constant dense<0.000000e+00> : vector<12x64xf32>
    %44 = tpu.matmul %41, %43, %cst_29 {dimension_numbers = #tpu.dot_dimension_numbers<[1], [0], [0], [1], [0, 0, 1, 1], [], []>} : vector<12x64xf32>, vector<64x64xf32>, vector<12x64xf32> -> vector<12x64xf32>
    %c17 = arith.constant 17 : index
    %c0_30 = arith.constant 0 : index
    %45 = vector.load %arg4[%c17, %c0_30] : memref<32x64xf32, #tpu.memory_space<vmem>>, vector<1x64xf32>
    %46 = vector.broadcast %45 : vector<1x64xf32> to vector<12x64xf32>
    %47 = arith.addf %44, %46 : vector<12x64xf32>
    %c0_31 = arith.constant 0 : index
    %c0_32 = arith.constant 0 : index
    %48 = vector.load %arg2[%c0_31, %c0_32] : memref<8x12xf32, #tpu.memory_space<vmem>>, vector<8x12xf32>
    %cst_33 = arith.constant dense<0.000000e+00> : vector<8x64xf32>
    %49 = tpu.matmul %48, %47, %cst_33 {dimension_numbers = #tpu.dot_dimension_numbers<[1], [0], [0], [1], [0, 0, 1, 1], [], []>} : vector<8x12xf32>, vector<12x64xf32>, vector<8x64xf32> -> vector<8x64xf32>
    %c5 = arith.constant 5 : index
    %c0_34 = arith.constant 0 : index
    %c0_35 = arith.constant 0 : index
    %50 = vector.load %arg3[%c5, %c0_34, %c0_35] : memref<10x64x64xf32, #tpu.memory_space<vmem>>, vector<1x64x64xf32>
    %51 = vector.shape_cast %50 : vector<1x64x64xf32> to vector<64x64xf32>
    %cst_36 = arith.constant dense<0.000000e+00> : vector<8x64xf32>
    %52 = tpu.matmul %49, %51, %cst_36 {dimension_numbers = #tpu.dot_dimension_numbers<[1], [0], [0], [1], [0, 0, 1, 1], [], []>} : vector<8x64xf32>, vector<64x64xf32>, vector<8x64xf32> -> vector<8x64xf32>
    %c18 = arith.constant 18 : index
    %c0_37 = arith.constant 0 : index
    %53 = vector.load %arg4[%c18, %c0_37] : memref<32x64xf32, #tpu.memory_space<vmem>>, vector<8x64xf32>
    %54 = arith.addf %52, %53 : vector<8x64xf32>
    %cst_38 = arith.constant 0.000000e+00 : f32
    %55 = vector.broadcast %cst_38 : f32 to vector<8x64xf32>
    %56 = arith.maximumf %54, %55 : vector<8x64xf32>
    %c6 = arith.constant 6 : index
    %c0_39 = arith.constant 0 : index
    %c0_40 = arith.constant 0 : index
    %57 = vector.load %arg3[%c6, %c0_39, %c0_40] : memref<10x64x64xf32, #tpu.memory_space<vmem>>, vector<1x64x64xf32>
    %58 = vector.shape_cast %57 : vector<1x64x64xf32> to vector<64x64xf32>
    %cst_41 = arith.constant dense<0.000000e+00> : vector<8x64xf32>
    %59 = tpu.matmul %56, %58, %cst_41 {dimension_numbers = #tpu.dot_dimension_numbers<[1], [0], [0], [1], [0, 0, 1, 1], [], []>} : vector<8x64xf32>, vector<64x64xf32>, vector<8x64xf32> -> vector<8x64xf32>
    %c26 = arith.constant 26 : index
    %c0_42 = arith.constant 0 : index
    %60 = vector.load %arg4[%c26, %c0_42] : memref<32x64xf32, #tpu.memory_space<vmem>>, vector<1x64xf32>
    %61 = vector.broadcast %60 : vector<1x64xf32> to vector<8x64xf32>
    %62 = arith.addf %59, %61 : vector<8x64xf32>
    %cst_43 = arith.constant 0.000000e+00 : f32
    %63 = vector.broadcast %cst_43 : f32 to vector<8x64xf32>
    %64 = arith.maximumf %62, %63 : vector<8x64xf32>
    %c7 = arith.constant 7 : index
    %c0_44 = arith.constant 0 : index
    %c0_45 = arith.constant 0 : index
    %65 = vector.load %arg3[%c7, %c0_44, %c0_45] : memref<10x64x64xf32, #tpu.memory_space<vmem>>, vector<1x64x64xf32>
    %66 = vector.shape_cast %65 : vector<1x64x64xf32> to vector<64x64xf32>
    %cst_46 = arith.constant dense<0.000000e+00> : vector<8x64xf32>
    %67 = tpu.matmul %64, %66, %cst_46 {dimension_numbers = #tpu.dot_dimension_numbers<[1], [0], [0], [1], [0, 0, 1, 1], [], []>} : vector<8x64xf32>, vector<64x64xf32>, vector<8x64xf32> -> vector<8x64xf32>
    %c27 = arith.constant 27 : index
    %c0_47 = arith.constant 0 : index
    %68 = vector.load %arg4[%c27, %c0_47] : memref<32x64xf32, #tpu.memory_space<vmem>>, vector<1x64xf32>
    %69 = vector.broadcast %68 : vector<1x64xf32> to vector<8x64xf32>
    %70 = arith.addf %67, %69 : vector<8x64xf32>
    %cst_48 = arith.constant 0.000000e+00 : f32
    %71 = vector.broadcast %cst_48 : f32 to vector<8x64xf32>
    %72 = arith.maximumf %70, %71 : vector<8x64xf32>
    %c8 = arith.constant 8 : index
    %c0_49 = arith.constant 0 : index
    %c0_50 = arith.constant 0 : index
    %73 = vector.load %arg3[%c8, %c0_49, %c0_50] : memref<10x64x64xf32, #tpu.memory_space<vmem>>, vector<1x64x64xf32>
    %74 = vector.shape_cast %73 : vector<1x64x64xf32> to vector<64x64xf32>
    %cst_51 = arith.constant dense<0.000000e+00> : vector<8x64xf32>
    %75 = tpu.matmul %72, %74, %cst_51 {dimension_numbers = #tpu.dot_dimension_numbers<[1], [0], [0], [1], [0, 0, 1, 1], [], []>} : vector<8x64xf32>, vector<64x64xf32>, vector<8x64xf32> -> vector<8x64xf32>
    %c28 = arith.constant 28 : index
    %c0_52 = arith.constant 0 : index
    %76 = vector.load %arg4[%c28, %c0_52] : memref<32x64xf32, #tpu.memory_space<vmem>>, vector<1x64xf32>
    %77 = vector.broadcast %76 : vector<1x64xf32> to vector<8x64xf32>
    %78 = arith.addf %75, %77 : vector<8x64xf32>
    %cst_53 = arith.constant 0.000000e+00 : f32
    %79 = vector.broadcast %cst_53 : f32 to vector<8x64xf32>
    %80 = arith.maximumf %78, %79 : vector<8x64xf32>
    %c9 = arith.constant 9 : index
    %c0_54 = arith.constant 0 : index
    %c0_55 = arith.constant 0 : index
    %81 = vector.load %arg3[%c9, %c0_54, %c0_55] : memref<10x64x64xf32, #tpu.memory_space<vmem>>, vector<1x64x64xf32>
    %82 = vector.shape_cast %81 : vector<1x64x64xf32> to vector<64x64xf32>
    %cst_56 = arith.constant dense<0.000000e+00> : vector<8x64xf32>
    %83 = tpu.matmul %80, %82, %cst_56 {dimension_numbers = #tpu.dot_dimension_numbers<[1], [0], [0], [1], [0, 0, 1, 1], [], []>} : vector<8x64xf32>, vector<64x64xf32>, vector<8x64xf32> -> vector<8x64xf32>
    %c29 = arith.constant 29 : index
    %c0_57 = arith.constant 0 : index
    %84 = vector.load %arg4[%c29, %c0_57] : memref<32x64xf32, #tpu.memory_space<vmem>>, vector<1x64xf32>
    %85 = vector.broadcast %84 : vector<1x64xf32> to vector<8x64xf32>
    %86 = arith.addf %83, %85 : vector<8x64xf32>
    %cst_58 = arith.constant 0.000000e+00 : f32
    %87 = vector.broadcast %cst_58 : f32 to vector<8x64xf32>
    %88 = arith.maximumf %86, %87 : vector<8x64xf32>
    %c30 = arith.constant 30 : index
    %c0_59 = arith.constant 0 : index
    %89 = vector.load %arg4[%c30, %c0_59] : memref<32x64xf32, #tpu.memory_space<vmem>>, vector<1x64xf32>
    %c31 = arith.constant 31 : index
    %c0_60 = arith.constant 0 : index
    %90 = vector.load %arg4[%c31, %c0_60] : memref<32x64xf32, #tpu.memory_space<vmem>>, vector<1x1xf32>
    %91 = vector.broadcast %89 : vector<1x64xf32> to vector<8x64xf32>
    %92 = arith.mulf %88, %91 : vector<8x64xf32>
    %cst_61 = arith.constant dense<0.000000e+00> : vector<8xf32>
    %93 = vector.multi_reduction <add>, %92, %cst_61 [1] : vector<8x64xf32> to vector<8xf32>
    %94 = vector.shape_cast %93 : vector<8xf32> to vector<8x1xf32>
    %95 = vector.broadcast %90 : vector<1x1xf32> to vector<8x1xf32>
    %96 = arith.addf %94, %95 : vector<8x1xf32>
    %c0_62 = arith.constant 0 : index
    %c0_63 = arith.constant 0 : index
    %c0_64 = arith.constant 0 : index
    %97 = vector.load %arg5[%c0_62, %c0_63, %c0_64] : memref<1x8x1xf32, #tpu.memory_space<vmem>>, vector<1x8x1xf32>
    %98 = vector.shape_cast %97 : vector<1x8x1xf32> to vector<8x1xf32>
    %99 = vector.shape_cast %96 : vector<8x1xf32> to vector<1x8x1xf32>
    tpu.vector_store %arg5[%c0_62, %c0_63, %c0_64], %99 {strides = array<i32>} : memref<1x8x1xf32, #tpu.memory_space<vmem>>, vector<1x8x1xf32>,
    return
  }
  func.func @transform_0(%arg0: i32) -> (i32, i32, i32) {
    %c0_i32 = arith.constant 0 : i32
    %c0_i32_0 = arith.constant 0 : i32
    %c0_i32_1 = arith.constant 0 : i32
    return %arg0, %c0_i32, %c0_i32_0 : i32, i32, i32
  }
  func.func @transform_1(%arg0: i32) -> (i32, i32) {
    %c0_i32 = arith.constant 0 : i32
    %c0_i32_0 = arith.constant 0 : i32
    %c0_i32_1 = arith.constant 0 : i32
    return %c0_i32, %c0_i32_0 : i32, i32
  }
  func.func @transform_2(%arg0: i32) -> (i32, i32, i32) {
    %c0_i32 = arith.constant 0 : i32
    %c0_i32_0 = arith.constant 0 : i32
    %c0_i32_1 = arith.constant 0 : i32
    %c0_i32_2 = arith.constant 0 : i32
    return %c0_i32, %c0_i32_0, %c0_i32_1 : i32, i32, i32
  }
  func.func @transform_3(%arg0: i32) -> (i32, i32) {
    %c0_i32 = arith.constant 0 : i32
    %c0_i32_0 = arith.constant 0 : i32
    %c0_i32_1 = arith.constant 0 : i32
    return %c0_i32, %c0_i32_0 : i32, i32
  }
  func.func @transform_4(%arg0: i32) -> (i32, i32, i32) {
    %c0_i32 = arith.constant 0 : i32
    %c0_i32_0 = arith.constant 0 : i32
    %c0_i32_1 = arith.constant 0 : i32
    return %arg0, %c0_i32, %c0_i32_0 : i32, i32, i32
  }
}

</mosaic_0001>

<bundles_post_ra>
// kernel: _lambda_.1
= control target key start
LH: loop header
LB: loop body
LE: loop exit
PB: predicated region body
PF: predicated region fallthrough
CT: control target
= control target key end

     0   :  { %s849_s15 = smov 0   ;;  %s1174_s0 = inlined_call_operand.vmem [shape: f32[4,12,1], index: 0, kind: input, shape index: {}]   ;;  %s1175_s1 = inlined_call_operand.vmem [shape: f32[8,12], index: 1, kind: input, shape index: {}]   ;;  %s1176_s2 = inlined_call_operand.vmem [shape: f32[10,64,64], index: 2, kind: input, shape index: {}]   ;;  %s1177_s3 = inlined_call_operand.vmem [shape: f32[32,64], index: 3, kind: input, shape index: {}]   ;;  %s1178_s4 = inlined_call_operand.vmem [shape: f32[4,8,1], index: 4, kind: output, shape index: {}]  }
   0x1 LB: > { %s693_s16 = sadd.s32 4294967295, %s821_s15   ;;  %p697_p0 = scmp.ge.s32.totalorder %s821_s15, 1  ;;  %s821_s15 = sphi %s849_s15, %s14_s15  }
   0x2   : > { %p162_p1 = scmp.lt.s32.totalorder %s821_s15, 5 }
   0x4   : > { %p163_p2 = pnand %p697_p0, %p162_p1 }
   0x5   : > { %p187_p3 = scmp.lt.s32.totalorder (!%p163_p2), %s693_s16, 3 }
   0x6   : > { %166 = sbr.rel (%p163_p2) target bundleno = 1723 (0x6bb), region = 36 }
   0xb   : > { %v225_v0 = vld [vmem:[%s1176_s2 + $0x38] sm:$0xff]  ;;  %v224_v1 = vld [vmem:[%s1176_s2 + $0x30] sm:$0xff]  ;;  %v823_v2 = vmov 0   ;;  %s1180_s16 = smov (!%p187_p3, %s693_s16), 3  ;;  %v223_v3 = vld [vmem:[%s1176_s2 + $0x28] sm:$0xff]  ;;  %vm228_vm0 = vcmask 523264  }
   0xc   : > { %802 = vset.pattern.permute.xlu0 %v823_v2  ;;  %243 = vmatpush.msra.mxu0 %v225_v0  ;;  %s792_s23 = sshll.u32 %s1180_s16, 4  ;;  %v222_v4 = vld [vmem:[%s1176_s2 + $0x20] sm:$0xff]  ;;  %v221_v6 = vld [vmem:[%s1176_s2 + $0x18] sm:$0xff]  ;;  %v220_v8 = vld [vmem:[%s1176_s2 + $0x10] sm:$0xff]  ;;  %vm431_vm1 = vcmask 1043456   ;;  %vm427_vm2 = vcmask 97280  }
   0xd   : > { %s191_s28 = scalar_lea.vmem %s1174_s0, %s792_s23  ;;  %v219_v9 = vld [vmem:[%s1176_s2 + $0x8] sm:$0xff]  ;;  %v218_v10 = vld [vmem:[%s1176_s2] sm:$0xff]  ;;  %v710_v11 = vld [vmem:[%s1176_s2 + $0x78] sm:$0xff]  ;;  %s700_s19 = sshll.u32 %s1180_s16, 3  ;;  %vm638_vm3 = vcmask 7168  }
   0xe   : > { %244 = vmatpush.msra.mxu0 %v224_v1  ;;  %v196_v5 = vld [vmem:[%s191_s28] sm:$0xff]  ;;  %v197_v7 = vld [vmem:[%s191_s28 + $0x8] sm:$0xf]  ;;  %v709_v12 = vld [vmem:[%s1176_s2 + $0x70] sm:$0xff]  ;;  %285 = vmatpush.msra.mxu1 %v710_v11  ;;  %s195_s24 = scalar_lea.vmem %s1178_s4, %s700_s19 }
   0xf   : > { %201 = vperm.xlu0 %802, %v196_v5   ;;  %v708_v13 = vld [vmem:[%s1176_s2 + $0x68] sm:$0xff]  ;;  %v707_v14 = vld [vmem:[%s1176_s2 + $0x60] sm:$0xff]  ;;  %v706_v15 = vld [vmem:[%s1176_s2 + $0x58] sm:$0xff] }
  0x10   : > { %245 = vmatpush.msra.mxu0 %v223_v3  ;;  %286 = vmatpush.msra.mxu1 %v709_v12  ;;  %v803_v16 = vld [vmem:[%s1177_s3] ss:$0 sm:$0xff]  ;;  %v212_v17 = vld [vmem:[%s1177_s3 + $0x1] sm:$0xff]  ;;  %v213_v22 = vld [vmem:[%s1177_s3 + $0x9] sm:$0xf] }
  0x11   : > { %v705_v27 = vld [vmem:[%s1176_s2 + $0x50] sm:$0xff]  ;;  %v704_v28 = vld [vmem:[%s1176_s2 + $0x48] sm:$0xff]  ;;  %v703_v29 = vld [vmem:[%s1176_s2 + $0x40] sm:$0xff] }
  0x12   : > { %246 = vmatpush.msra.mxu0 %v222_v4  ;;  %287 = vmatpush.msra.mxu1 %v708_v13  ;;  %v720_v30 = vld [vmem:[%s1176_s2 + $0xb8] sm:$0xff]  ;;  %v719_v31 = vld [vmem:[%s1176_s2 + $0xb0] sm:$0xff]  ;;  %v718_v32 = vld [vmem:[%s1176_s2 + $0xa8] sm:$0xff] }
  0x13   : > { %327 = vmatpush.msra.mxu2 %v720_v30  ;;  %v717_v33 = vld [vmem:[%s1176_s2 + $0xa0] sm:$0xff]  ;;  %v716_v34 = vld [vmem:[%s1176_s2 + $0x98] sm:$0xff]  ;;  %v804_v35 = vld [vmem:[%s1177_s3 + $0xd] ss:$0 sm:$0xff] }
  0x14   : > { %247 = vmatpush.msra.mxu0 %v221_v6  ;;  %288 = vmatpush.msra.mxu1 %v707_v14  ;;  %v715_v42 = vld [vmem:[%s1176_s2 + $0x90] sm:$0xff]  ;;  %v714_v43 = vld [vmem:[%s1176_s2 + $0x88] sm:$0xff]  ;;  %v713_v44 = vld [vmem:[%s1176_s2 + $0x80] sm:$0xff] }
  0x15   : > { %328 = vmatpush.msra.mxu2 %v719_v31  ;;  %v730_v45 = vld [vmem:[%s1176_s2 + $0xf8] sm:$0xff]  ;;  %v729_v46 = vld [vmem:[%s1176_s2 + $0xf0] sm:$0xff]  ;;  %v728_v47 = vld [vmem:[%s1176_s2 + $0xe8] sm:$0xff] }
  0x16   : > { %248 = vmatpush.msra.mxu0 %v220_v8  ;;  %289 = vmatpush.msra.mxu1 %v706_v15  ;;  %v727_v48 = vld [vmem:[%s1176_s2 + $0xe0] sm:$0xff]  ;;  %v726_v49 = vld [vmem:[%s1176_s2 + $0xd8] sm:$0xff]  ;;  %v805_v50 = vld [vmem:[%s1177_s3 + $0xe] ss:$0 sm:$0xff] }
  0x17   : > { %206 = vperm.xlu0 %802, %v197_v7   ;;  %329 = vmatpush.msra.mxu2 %v718_v32  ;;  %v725_v57 = vld [vmem:[%s1176_s2 + $0xd0] sm:$0xff]  ;;  %v724_v58 = vld [vmem:[%s1176_s2 + $0xc8] sm:$0xff]  ;;  %v723_v59 = vld [vmem:[%s1176_s2 + $0xc0] sm:$0xff] }
  0x18   : > { %249 = vmatpush.msra.mxu0 %v219_v9  ;;  %290 = vmatpush.msra.mxu1 %v705_v27  ;;  %v740_v60 = vld [vmem:[%s1176_s2 + $0x138] sm:$0xff]  ;;  %v739_v61 = vld [vmem:[%s1176_s2 + $0x130] sm:$0xff]  ;;  %v738_v62 = vld [vmem:[%s1176_s2 + $0x128] sm:$0xff] }
  0x19   : > { %330 = vmatpush.msra.mxu2 %v717_v33  ;;  %369 = vmatpush.msra.mxu3 %v730_v45  ;;  %v737_v63 = vld [vmem:[%s1176_s2 + $0x120] sm:$0xff]  ;;  %v736_v0 = vld [vmem:[%s1176_s2 + $0x118] sm:$0xff]  ;;  %v806_v1 = vld [vmem:[%s1177_s3 + $0xf] ss:$0 sm:$0xff] }
  0x1a   : > { %250 = vmatpush.msra.mxu0 %v218_v10  ;;  %291 = vmatpush.msra.mxu1 %v704_v28  ;;  %v735_v8 = vld [vmem:[%s1176_s2 + $0x110] sm:$0xff]  ;;  %v734_v9 = vld [vmem:[%s1176_s2 + $0x108] sm:$0xff]  ;;  %v733_v10 = vld [vmem:[%s1176_s2 + $0x100] sm:$0xff] }
  0x1b   : > { %331 = vmatpush.msra.mxu2 %v716_v34  ;;  %370 = vmatpush.msra.mxu3 %v729_v46  ;;  %v807_v11 = vld [vmem:[%s1177_s3 + $0x10] ss:$0 sm:$0xff]  ;;  %v808_v27 = vld [vmem:[%s1177_s3 + $0x11] ss:$0 sm:$0xff]  ;;  %v426_v31 = vld [vmem:[%s1175_s1] sm:$0xff] }
  0x1c   : > { %292 = vmatpush.msra.mxu1 %v703_v29  ;;  %411 = vmatpush.msrb.mxu0 %v740_v60  ;;  %v761_v32 = vld [vmem:[%s1176_s2 + $0x1b8] sm:$0xff]  ;;  %v760_v33 = vld [vmem:[%s1176_s2 + $0x1b0] sm:$0xff]  ;;  %v759_v34 = vld [vmem:[%s1176_s2 + $0x1a8] sm:$0xff] }
  0x1d   : > { %332 = vmatpush.msra.mxu2 %v715_v42  ;;  %371 = vmatpush.msra.mxu3 %v728_v47  ;;  %v769_v42 = vld [vmem:[%s1176_s2 + $0x1f0] sm:$0xff]  ;;  %v766_v45 = vld [vmem:[%s1176_s2 + $0x1d8] sm:$0xff] }
  0x1e   : > { %412 = vmatpush.msrb.mxu0 %v739_v61  ;;  %v765_v46 = vld [vmem:[%s1176_s2 + $0x1d0] sm:$0xff] }
  0x1f   : > { %333 = vmatpush.msra.mxu2 %v714_v43  ;;  %372 = vmatpush.msra.mxu3 %v727_v48  ;;  %v768_v43 = vld [vmem:[%s1176_s2 + $0x1e8] sm:$0xff]  ;;  %v464_v47 = vld [vmem:[%s1177_s3 + $0x12] sm:$0xff] }
  0x20   : > { %413 = vmatpush.msrb.mxu0 %v738_v62  ;;  %v774_v62 = vld [vmem:[%s1176_s2 + $0x210] sm:$0xff] }
  0x21   : > { %334 = vmatpush.msra.mxu2 %v713_v44  ;;  %373 = vmatpush.msra.mxu3 %v726_v49  ;;  %v767_v44 = vld [vmem:[%s1176_s2 + $0x1e0] sm:$0xff] }
  0x22   : > { %414 = vmatpush.msrb.mxu0 %v737_v63  ;;  %v773_v63 = vld [vmem:[%s1176_s2 + $0x208] sm:$0xff] }
  0x23   : > { %374 = vmatpush.msra.mxu3 %v725_v57  ;;  %v775_v57 = vld [vmem:[%s1176_s2 + $0x218] sm:$0xff] }
  0x24   : > { %415 = vmatpush.msrb.mxu0 %v736_v0  ;;  %v772_v0 = vld [vmem:[%s1176_s2 + $0x200] sm:$0xff] }
  0x25   : > { %375 = vmatpush.msra.mxu3 %v724_v58  ;;  %v809_v58 = vld [vmem:[%s1177_s3 + $0x1a] ss:$0 sm:$0xff] }
  0x26   : > { %416 = vmatpush.msrb.mxu0 %v735_v8 }
  0x27   : > { %376 = vmatpush.msra.mxu3 %v723_v59 }
  0x28   : > { %417 = vmatpush.msrb.mxu0 %v734_v9 }
  0x29   : > { %511 = vmatpush.msrb.mxu3 %v761_v32 }
  0x2a   : > { %418 = vmatpush.msrb.mxu0 %v733_v10  ;;  %v783_v10 = vld [vmem:[%s1176_s2 + $0x250] sm:$0xff] }
  0x2b   : > { %512 = vmatpush.msrb.mxu3 %v760_v33 }
  0x2d   : > { %513 = vmatpush.msrb.mxu3 %v759_v34 }
  0x81   : > { %v202_v18 = vpop.permute.xlu0 %201 }
  0x82   : > { %v210_v19 = vmul.f32 %v803_v16, %v202_v18  ;;  %v752_v18 = vld [vmem:[%s1176_s2 + $0x178] sm:$0xff] }
  0x83   : > { %476 = vmatpush.msrb.mxu2 %v752_v18 }
  0x84   : > { %v214_v20 = vadd.f32 %v212_v17, %v210_v19  ;;  %v751_v19 = vld [vmem:[%s1176_s2 + $0x170] sm:$0xff] }
  0x85   : > { %477 = vmatpush.msrb.mxu2 %v751_v19 }
  0x86   : > { %v216_v21 = vmax.f32 %v214_v20, 0.0  ;;  %v750_v20 = vld [vmem:[%s1176_s2 + $0x168] sm:$0xff] }
  0x87   : > { %478 = vmatpush.msrb.mxu2 %v750_v20  ;;  %v813_v20 = vld [vmem:[%s1177_s3 + $0x1e] ss:$0 sm:$0xff] }
  0x88   : > { %701 = vmatmul.msk.f32.vlgmr.msra.gmra.mxu0 %vm228_vm0, %v216_v21  ;;  %v749_v21 = vld [vmem:[%s1176_s2 + $0x160] sm:$0xff] }
  0x89   : > { %v207_v23 = vpop.permute.xlu0 %206  ;;  %479 = vmatpush.msrb.mxu2 %v749_v21 }
  0x8a   : > { %v211_v24 = vmul.f32 %v803_v16, %v207_v23  ;;  %v747_v23 = vld [vmem:[%s1176_s2 + $0x150] sm:$0xff] }
  0x8c   : > { %v215_v25 = vadd.f32 %v213_v22, %v211_v24  ;;  %v748_v22 = vld [vmem:[%s1176_s2 + $0x158] sm:$0xff]  ;;  %v746_v24 = vld [vmem:[%s1176_s2 + $0x148] sm:$0xff] }
  0x8d   : > { %480 = vmatpush.msrb.mxu2 %v748_v22 }
  0x8e   : > { %v217_v26 = vmax.f32 %v215_v25, 0.0  ;;  %v745_v25 = vld [vmem:[%s1176_s2 + $0x140] sm:$0xff] }
  0x8f   : > { %481 = vmatpush.msrb.mxu2 %v747_v23 }
  0x90   : > { %702 = vmatmul.msk.f32.gmra.mxu0 %vm228_vm0, %v217_v26 }
  0x91   : > { %482 = vmatpush.msrb.mxu2 %v746_v24  ;;  %v814_v24 = vld [vmem:[%s1177_s3 + $0x1f] ss:$0 sm:$0xff] }
  0x93   : > { %483 = vmatpush.msrb.mxu2 %v745_v25 }
 0x105   : > { %v252_v36 = vpop.f32.mrf.mxu0 }
 0x106   : > { %v253_v37 = vadd.f32 %v804_v35, %v252_v36  ;;  %v757_v36 = vld [vmem:[%s1176_s2 + $0x198] sm:$0xff] }
 0x108   : > { %v258_v38 = vmax.f32 %v253_v37, 0.0  ;;  %v756_v37 = vld [vmem:[%s1176_s2 + $0x190] sm:$0xff] }
 0x10a   : > { %711 = vmatmul.msk.f32.vlgmr.msra.gmra.mxu1 %vm228_vm0, %v258_v38 }
 0x10d   : > { %v255_v39 = vpop.f32.mrf.mxu0 }
 0x10e   : > { %v256_v40 = vadd.f32 %v804_v35, %v255_v39  ;;  %v758_v35 = vld [vmem:[%s1176_s2 + $0x1a0] sm:$0xff]  ;;  %v755_v39 = vld [vmem:[%s1176_s2 + $0x188] sm:$0xff] }
 0x10f   : > { %514 = vmatpush.msrb.mxu3 %v758_v35 }
 0x110   : > { %v259_v41 = vmax.f32 %v256_v40, 0.0  ;;  %v754_v40 = vld [vmem:[%s1176_s2 + $0x180] sm:$0xff] }
 0x111   : > { %515 = vmatpush.msrb.mxu3 %v757_v36 }
 0x112   : > { %712 = vmatmul.msk.f32.gmra.mxu1 %vm228_vm0, %v259_v41  ;;  %v770_v41 = vld [vmem:[%s1176_s2 + $0x1f8] sm:$0xff] }
 0x113   : > { %516 = vmatpush.msrb.mxu3 %v756_v37  ;;  %546 = vmatpush.msra.mxu0 %v770_v41 }
 0x115   : > { %517 = vmatpush.msrb.mxu3 %v755_v39  ;;  %547 = vmatpush.msra.mxu0 %v769_v42 }
 0x117   : > { %518 = vmatpush.msrb.mxu3 %v754_v40  ;;  %548 = vmatpush.msra.mxu0 %v768_v43 }
 0x119   : > { %549 = vmatpush.msra.mxu0 %v767_v44 }
 0x11b   : > { %550 = vmatpush.msra.mxu0 %v766_v45 }
 0x11d   : > { %551 = vmatpush.msra.mxu0 %v765_v46 }
 0x187   : > { %v294_v51 = vpop.f32.mrf.mxu1 }
 0x188   : > { %v295_v52 = vadd.f32 %v805_v50, %v294_v51  ;;  %v764_v51 = vld [vmem:[%s1176_s2 + $0x1c8] sm:$0xff] }
 0x189   : > { %552 = vmatpush.msra.mxu0 %v764_v51 }
 0x18a   : > { %v300_v53 = vmax.f32 %v295_v52, 0.0  ;;  %v763_v52 = vld [vmem:[%s1176_s2 + $0x1c0] sm:$0xff] }
 0x18b   : > { %553 = vmatpush.msra.mxu0 %v763_v52 }
 0x18c   : > { %721 = vmatmul.msk.f32.vlgmr.msra.gmra.mxu2 %vm228_vm0, %v300_v53  ;;  %v779_v53 = vld [vmem:[%s1176_s2 + $0x238] sm:$0xff] }
 0x18f   : > { %v297_v54 = vpop.f32.mrf.mxu1 }
 0x190   : > { %v298_v55 = vadd.f32 %v805_v50, %v297_v54  ;;  %v778_v54 = vld [vmem:[%s1176_s2 + $0x230] sm:$0xff] }
 0x192   : > { %v301_v56 = vmax.f32 %v298_v55, 0.0  ;;  %v777_v55 = vld [vmem:[%s1176_s2 + $0x228] sm:$0xff] }
 0x194   : > { %722 = vmatmul.msk.f32.gmra.mxu2 %vm228_vm0, %v301_v56  ;;  %v776_v56 = vld [vmem:[%s1176_s2 + $0x220] sm:$0xff] }
 0x20f   : > { %v336_v2 = vpop.f32.mrf.mxu2 }
 0x210   : > { %v337_v3 = vadd.f32 %v806_v1, %v336_v2  ;;  %v787_v2 = vld [vmem:[%s1176_s2 + $0x270] sm:$0xff] }
 0x212   : > { %v342_v4 = vmax.f32 %v337_v3, 0.0  ;;  %v786_v3 = vld [vmem:[%s1176_s2 + $0x268] sm:$0xff] }
 0x214   : > { %731 = vmatmul.msk.f32.vlgmr.msra.gmra.mxu3 %vm228_vm0, %v342_v4  ;;  %v785_v4 = vld [vmem:[%s1176_s2 + $0x260] sm:$0xff] }
 0x217   : > { %v339_v5 = vpop.f32.mrf.mxu2 }
 0x218   : > { %v340_v6 = vadd.f32 %v806_v1, %v339_v5  ;;  %v788_v1 = vld [vmem:[%s1176_s2 + $0x278] sm:$0xff] }
 0x219   : > { %616 = vmatpush.msra.mxu2 %v788_v1  ;;  %v784_v5 = vld [vmem:[%s1176_s2 + $0x258] sm:$0xff] }
 0x21a   : > { %v343_v7 = vmax.f32 %v340_v6, 0.0  ;;  %v810_v6 = vld [vmem:[%s1177_s3 + $0x1b] ss:$0 sm:$0xff] }
 0x21b   : > { %617 = vmatpush.msra.mxu2 %v787_v2 }
 0x21c   : > { %732 = vmatmul.msk.f32.gmra.mxu3 %vm228_vm0, %v343_v7 }
 0x21d   : > { %618 = vmatpush.msra.mxu2 %v786_v3 }
 0x21f   : > { %619 = vmatpush.msra.mxu2 %v785_v4 }
 0x221   : > { %620 = vmatpush.msra.mxu2 %v784_v5 }
 0x223   : > { %621 = vmatpush.msra.mxu2 %v783_v10 }
 0x297   : > { %v378_v12 = vpop.f32.mrf.mxu3 }
 0x298   : > { %v379_v13 = vadd.f32 %v807_v11, %v378_v12  ;;  %v781_v12 = vld [vmem:[%s1176_s2 + $0x240] sm:$0xff] }
 0x29a   : > { %v384_v14 = vmax.f32 %v379_v13, 0.0  ;;  %v811_v13 = vld [vmem:[%s1177_s3 + $0x1c] ss:$0 sm:$0xff] }
 0x29c   : > { %741 = vmatmul.msk.f32.vlgmr.msrb.gmra.mxu0 %vm228_vm0, %v384_v14 }
 0x29f   : > { %v381_v15 = vpop.f32.mrf.mxu3 }
 0x2a0   : > { %v382_v16 = vadd.f32 %v807_v11, %v381_v15  ;;  %v782_v11 = vld [vmem:[%s1176_s2 + $0x248] sm:$0xff] }
 0x2a1   : > { %622 = vmatpush.msra.mxu2 %v782_v11 }
 0x2a2   : > { %v385_v17 = vmax.f32 %v382_v16, 0.0 }
 0x2a3   : > { %623 = vmatpush.msra.mxu2 %v781_v12 }
 0x2a4   : > { %742 = vmatmul.msk.f32.gmra.mxu0 %vm228_vm0, %v385_v17  ;;  %v812_v17 = vld [vmem:[%s1177_s3 + $0x1d] ss:$0 sm:$0xff] }
 0x319   : > { %v420_v26 = vpop.f32.mrf.mxu0 }
 0x31a   : > { %v421_v30 = vadd.f32 %v808_v27, %v420_v26 }
 0x321   : > { %v423_v28 = vpop.f32.mrf.mxu0 }
 0x322   : > { %v424_v29 = vadd.f32 %v808_v27, %v423_v28 }
 0x324   : > { %743 = vmatpush.msk.msrb.mxu1 %vm431_vm1, %v424_v29 }
 0x326   : > { %450 = vmatpush.msrb.mxu1 %v421_v30 }
 0x327   : > { %744 = vmatmul.msk.f32.vlgmr.msrb.gmra.mxu1 %vm427_vm2, %v426_v31 }
 0x328   : > { %581 = vmatpush.msra.mxu1 %v779_v53 }
 0x32a   : > { %582 = vmatpush.msra.mxu1 %v778_v54 }
 0x32c   : > { %583 = vmatpush.msra.mxu1 %v777_v55 }
 0x32e   : > { %584 = vmatpush.msra.mxu1 %v776_v56 }
 0x330   : > { %585 = vmatpush.msra.mxu1 %v775_v57 }
 0x332   : > { %586 = vmatpush.msra.mxu1 %v774_v62 }
 0x334   : > { %587 = vmatpush.msra.mxu1 %v773_v63 }
 0x336   : > { %588 = vmatpush.msra.mxu1 %v772_v0 }
 0x3a4   : > { %v452_v38 = vpop.f32.mrf.mxu1 }
 0x3a5   : > { %753 = vmatmul.msk.f32.vlgmr.msrb.gmra.mxu2 %vm228_vm0, %v452_v38 }
 0x428   : > { %v485_v48 = vpop.f32.mrf.mxu2 }
 0x429   : > { %v486_v49 = vadd.f32 %v485_v48, %v464_v47 }
 0x42b   : > { %v488_v50 = vmax.f32 %v486_v49, 0.0 }
 0x42d   : > { %762 = vmatmul.msk.f32.vlgmr.msrb.gmra.mxu3 %vm228_vm0, %v488_v50 }
 0x4b0   : > { %v520_v59 = vpop.f32.mrf.mxu3 }
 0x4b1   : > { %v521_v60 = vadd.f32 %v809_v58, %v520_v59 }
 0x4b3   : > { %v523_v61 = vmax.f32 %v521_v60, 0.0 }
 0x4b5   : > { %771 = vmatmul.msk.f32.vlgmr.msra.gmra.mxu0 %vm228_vm0, %v523_v61 }
 0x532   : > { %v555_v7 = vpop.f32.mrf.mxu0 }
 0x533   : > { %v556_v8 = vadd.f32 %v810_v6, %v555_v7 }
 0x535   : > { %v558_v9 = vmax.f32 %v556_v8, 0.0 }
 0x537   : > { %780 = vmatmul.msk.f32.vlgmr.msra.gmra.mxu1 %vm228_vm0, %v558_v9 }
 0x5b4   : > { %v590_v14 = vpop.f32.mrf.mxu1 }
 0x5b5   : > { %v591_v15 = vadd.f32 %v811_v13, %v590_v14 }
 0x5b7   : > { %v593_v16 = vmax.f32 %v591_v15, 0.0 }
 0x5b9   : > { %789 = vmatmul.msk.f32.vlgmr.msra.gmra.mxu2 %vm228_vm0, %v593_v16 }
 0x63c   : > { %v625_v18 = vpop.f32.mrf.mxu2 }
 0x63d   : > { %v626_v19 = vadd.f32 %v812_v17, %v625_v18 }
 0x63f   : > { %v628_v21 = vmax.f32 %v626_v19, 0.0 }
 0x641   : > { %v632_v22 = vmul.f32 %v813_v20, %v628_v21 }
 0x643   : > { %v633_v23 = vsel %vm228_vm0, %v632_v22, 0.0 }
 0x644   : > { %634 = vadd.xlane.f32.xlu1 %v633_v23 }
 0x6b7   : > { %v635_v25 = vpop.xlane.xlu1 %634 }
 0x6b8   : > { %v637_v26 = vadd.f32 %v814_v24, %v635_v25 }
 0x6ba   : > { %639 = vst.msk [vmem:[%s195_s24] sm:$0xff] %vm638_vm3, %v637_v26 }
 0x6bb PF: > { %s14_s15 = sadd.s32 1, %s821_s15  }
 0x6bc   : > { %p11_p4 = scmp.ge.s32.totalorder %s14_s15, 6  }
 0x6be   :  { %13 = sbr.rel (!%p11_p4) target bundleno = 1 (0x1), region = 75 }

</bundles_post_ra>
